<compile_context>
chip_gen: v7x
topology: tpu7x:2x2x1
jax: 0.10.0
libtpu: 0.0.40
codegen_flags: <defaults>
</compile_context>

<pallas_src>
import numpy as np
import jax
import jax.numpy as jnp
from jax.experimental import pallas as pl
from jax.experimental.pallas import tpu as pltpu


_EPS = 1e-5
_SLOPE = 0.2

# Per-layer config: (cin, cout, stride, use_instance_norm, use_leaky_relu)
def _cfgs(channel):
    return [
        (channel, 64, 2, False, True),
        (64, 128, 2, True, True),
        (128, 256, 2, True, True),
        (256, 512, 1, True, True),
        (512, 1, 1, False, False),
    ]


# Layers fused into a single pallas_call.  A stride-2 layer can only be the
# head of a group (its input is space-to-depth'd by the wrapper); the stride-1
# tail layers read their zero-padded input from VMEM scratch.
_GROUPS = ((0,), (1,), (2, 3, 4))


def _make_group_kernel(layer_cfgs, Hout, Wout):
    """Chain of 3x3 convs: strided head via phase-folded input, stride-1 tail
    layers via zero-padded VMEM scratch intermediates."""
    n_layers = len(layer_cfgs)
    M = Hout * Wout

    def kernel(x_ref, *args):
        w_refs = args[0:2 * n_layers:2]          # (9*cin, cout) bf16
        b_refs = args[1:2 * n_layers:2]          # (1, cout) f32
        o_ref = args[2 * n_layers]
        scratch_refs = args[2 * n_layers + 1:]   # (Hout+2, Wout+2, cout) bf16

        # Patch reader for the (phase-folded, pre-padded) group input.
        def head_read(dh, dw, c0, cn):
            return x_ref[0, pl.ds(dh, Hout), pl.ds(dw, Wout), pl.ds(c0, cn)]

        read = head_read
        for j, (cin, cout, stride, use_norm, use_act) in enumerate(layer_cfgs):
            # --- im2col: 9 contiguous taps -> (M, 9*cin), then ONE matmul ---
            cols = []
            for kh in range(3):
                for kw in range(3):
                    dh, ah = divmod(kh, stride)
                    dw, aw = divmod(kw, stride)
                    phase = ah * stride + aw
                    tap = read(dh, dw, phase * cin, cin)     # (Hout, Wout, cin)
                    cols.append(tap.reshape(M, cin))
            patches = jnp.concatenate(cols, axis=-1)          # (M, 9*cin) bf16
            acc = jnp.dot(patches, w_refs[j][...],
                          preferred_element_type=jnp.float32)  # (M, cout) f32

            if use_norm:
                # InstanceNorm2d (no affine, biased variance), single-pass
                # statistics.  Conv bias skipped: the mean subtraction cancels
                # it exactly.
                inv_m = 1.0 / M
                mean = jnp.sum(acc, axis=0, keepdims=True) * inv_m
                ex2 = jnp.sum(acc * acc, axis=0, keepdims=True) * inv_m
                var = jnp.maximum(ex2 - mean * mean, 0.0)
                acc = (acc - mean) * jax.lax.rsqrt(var + _EPS)
            else:
                acc = acc + b_refs[j][...]
            if use_act:
                acc = jnp.where(acc > 0, acc, _SLOPE * acc)   # LeakyReLU(0.2)

            if j + 1 < n_layers:
                # Next fused layer's zero-padded input - stays in VMEM.
                scr = scratch_refs[j]
                scr[...] = jnp.zeros(scr.shape, scr.dtype)
                scr[pl.ds(1, Hout), pl.ds(1, Wout), :] = (
                    acc.reshape(Hout, Wout, cout).astype(scr.dtype))

                def read(dh, dw, c0, cn, _scr=scr):
                    return _scr[pl.ds(dh, Hout), pl.ds(dw, Wout), pl.ds(c0, cn)]
            else:
                o_ref[0] = acc.reshape(Hout, Wout, cout).astype(o_ref.dtype)

    return kernel


def _space_to_depth(x_pad, s):
    """(N, Hp, Wp, C) -> (N, Hp//s, Wp//s, s*s*C): phase (a, b) folded into the
    channel axis so stride-s taps become contiguous channel slices."""
    if s == 1:
        return x_pad
    N, Hp, Wp, C = x_pad.shape
    x = x_pad.reshape(N, Hp // s, s, Wp // s, s, C)
    x = x.transpose(0, 1, 3, 2, 4, 5)
    return x.reshape(N, Hp // s, Wp // s, s * s * C)


def conv_group(x_nhwc, layer_params, layer_cfgs, out_dtype):
    """Run one fused group of conv layers as a single pallas_call."""
    N, H, W, Cin = x_nhwc.shape
    head_cin, _, s, _, _ = layer_cfgs[0]
    assert Cin == head_cin
    assert (H + 2) % s == 0 and (W + 2) % s == 0, \
        "spatial dims must be even for stride-2 layers"
    for cfg in layer_cfgs[1:]:
        assert cfg[2] == 1, "only the group head may be strided"

    Hout, Wout = H // s, W // s
    x_pad = jnp.pad(x_nhwc, ((0, 0), (1, 1), (1, 1), (0, 0)))   # padding=1
    x_in = _space_to_depth(x_pad, s)                  # (N, Hs, Ws, s*s*Cin)
    _, Hs, Ws, Cfold = x_in.shape

    operands = [x_in]
    in_specs = [pl.BlockSpec((1, Hs, Ws, Cfold), lambda n: (n, 0, 0, 0))]
    for (w, b), (cin, cout, _stride, _norm, _act) in zip(layer_params, layer_cfgs):
        w_flat = w.reshape(9 * cin, cout).astype(jnp.bfloat16)   # (kh,kw,cin)xcout
        b_row = b.reshape(1, cout).astype(jnp.float32)
        operands += [w_flat, b_row]
        in_specs += [
            pl.BlockSpec((9 * cin, cout), lambda n: (0, 0)),
            pl.BlockSpec((1, cout), lambda n: (0, 0)),
        ]

    scratch_shapes = [
        pltpu.VMEM((Hout + 2, Wout + 2, cout), jnp.bfloat16)
        for (_cin, cout, _s, _n, _a) in layer_cfgs[:-1]
    ]
    cout_last = layer_cfgs[-1][1]

    kernel = _make_group_kernel(layer_cfgs, Hout, Wout)
    return pl.pallas_call(
        kernel,
        out_shape=jax.ShapeDtypeStruct((N, Hout, Wout, cout_last), out_dtype),
        grid_spec=pltpu.PrefetchScalarGridSpec(
            num_scalar_prefetch=0,
            grid=(N,),
            in_specs=in_specs,
            out_specs=pl.BlockSpec((1, Hout, Wout, cout_last),
                                   lambda n: (n, 0, 0, 0)),
            scratch_shapes=scratch_shapes,
        ),
        compiler_params=pltpu.CompilerParams(
            dimension_semantics=("parallel",),       # batch across megacore TCs
            vmem_limit_bytes=64 * 1024 * 1024,
        ),
    )(*operands)


def init_params(key, channel=3):
    """Deterministic synthetic parameters (shapes match the PyTorch module)."""
    params = []
    for (cin, cout, _s, _n, _a) in _cfgs(channel):
        key, kw, kb = jax.random.split(key, 3)
        fan_in = 9 * cin
        w = jax.random.normal(kw, (3, 3, cin, cout), jnp.float32) / np.sqrt(fan_in)
        b = 0.01 * jax.random.normal(kb, (cout,), jnp.float32)
        params.append((w, b))
    return params


def discriminator_forward(x_nchw, params, channel=3):
    cfgs = _cfgs(channel)
    x = jnp.transpose(x_nchw, (0, 2, 3, 1)).astype(jnp.bfloat16)  # NCHW -> NHWC
    for gi, group in enumerate(_GROUPS):
        last = gi == len(_GROUPS) - 1
        x = conv_group(
            x,
            [params[i] for i in group],
            [cfgs[i] for i in group],
            out_dtype=jnp.float32 if last else jnp.bfloat16,
        )
    return jnp.transpose(x, (0, 3, 1, 2))                          # NHWC -> NCHW


def ref_forward(x_nchw, params, channel=3):
    """Pure-JAX reference (lax conv), with the same bf16 layer boundaries."""
    x = jnp.transpose(x_nchw, (0, 2, 3, 1))
    for (w, b), (_cin, _cout, s, norm, act) in zip(params, _cfgs(channel)):
        y = jax.lax.conv_general_dilated(
            x.astype(jnp.bfloat16), w.astype(jnp.bfloat16),
            (s, s), ((1, 1), (1, 1)),
            dimension_numbers=("NHWC", "HWIO", "NHWC"),
            preferred_element_type=jnp.float32)
        y = y + b.astype(jnp.float32)
        if norm:
            mean = jnp.mean(y, axis=(1, 2), keepdims=True)
            var = jnp.var(y, axis=(1, 2), keepdims=True)
            y = (y - mean) * jax.lax.rsqrt(var + _EPS)
        if act:
            y = jnp.where(y > 0, y, _SLOPE * y)
        x = y
    return jnp.transpose(x, (0, 3, 1, 2)).astype(jnp.float32)


if __name__ == "__main__":
    key = jax.random.PRNGKey(0)
    k_x, k_p = jax.random.split(key)
    channel = 3
    x = jax.random.normal(k_x, (2, channel, 16, 16), jnp.float32)  # NCHW
    params = init_params(k_p, channel)

    out = discriminator_forward(x, params, channel)
    out = jax.block_until_ready(out)
    assert out.shape == (2, 1, 2, 2), out.shape

    ref = ref_forward(x, params, channel)
    np.testing.assert_allclose(np.asarray(out), np.asarray(ref),
                               rtol=1e-2, atol=1e-2)
    print("KERNEL_OK")
</pallas_src>

<mosaic_0001>
module attributes {stable_mosaic.version = 11 : i64} {
  func.func @kernel(%arg0: i32, %arg1: memref<1x9x9x12xbf16, #tpu.memory_space<vmem>>, %arg2: memref<27x64xbf16, #tpu.memory_space<vmem>>, %arg3: memref<1x64xf32, #tpu.memory_space<vmem>>, %arg4: memref<1x8x8x64xbf16, #tpu.memory_space<vmem>>) attributes {dimension_semantics = [#tpu.dimension_semantics<parallel>], iteration_bounds = array<i64: 2>, scalar_prefetch = 0 : i64, scratch_operands = 0 : i64, tpu.core_type = #tpu.core_type<tc>, window_params = [{transform_indices = @transform_0, window_bounds = array<i64: 1, 9, 9, 12>}, {pipeline_mode = #tpu.pipeline_mode<synchronous>, transform_indices = @transform_1, window_bounds = array<i64: 27, 64>}, {pipeline_mode = #tpu.pipeline_mode<synchronous>, transform_indices = @transform_2, window_bounds = array<i64: 1, 64>}, {transform_indices = @transform_3, window_bounds = array<i64: 1, 8, 8, 64>}]} {
    %c0 = arith.constant 0 : index
    %c0_0 = arith.constant 0 : index
    %c0_1 = arith.constant 0 : index
    %c0_2 = arith.constant 0 : index
    %0 = vector.load %arg1[%c0, %c0_0, %c0_1, %c0_2] : memref<1x9x9x12xbf16, #tpu.memory_space<vmem>>, vector<1x8x8x3xbf16>
    %1 = vector.shape_cast %0 : vector<1x8x8x3xbf16> to vector<8x8x3xbf16>
    %2 = vector.shape_cast %1 : vector<8x8x3xbf16> to vector<64x3xbf16>
    %c0_3 = arith.constant 0 : index
    %c0_4 = arith.constant 0 : index
    %c0_5 = arith.constant 0 : index
    %c3 = arith.constant 3 : index
    %3 = vector.load %arg1[%c0_3, %c0_4, %c0_5, %c3] : memref<1x9x9x12xbf16, #tpu.memory_space<vmem>>, vector<1x8x8x3xbf16>
    %4 = vector.shape_cast %3 : vector<1x8x8x3xbf16> to vector<8x8x3xbf16>
    %5 = vector.shape_cast %4 : vector<8x8x3xbf16> to vector<64x3xbf16>
    %c0_6 = arith.constant 0 : index
    %c0_7 = arith.constant 0 : index
    %c1 = arith.constant 1 : index
    %c0_8 = arith.constant 0 : index
    %6 = vector.load %arg1[%c0_6, %c0_7, %c1, %c0_8] : memref<1x9x9x12xbf16, #tpu.memory_space<vmem>>, vector<1x8x8x3xbf16>
    %7 = vector.shape_cast %6 : vector<1x8x8x3xbf16> to vector<8x8x3xbf16>
    %8 = vector.shape_cast %7 : vector<8x8x3xbf16> to vector<64x3xbf16>
    %c0_9 = arith.constant 0 : index
    %c0_10 = arith.constant 0 : index
    %c0_11 = arith.constant 0 : index
    %c6 = arith.constant 6 : index
    %9 = vector.load %arg1[%c0_9, %c0_10, %c0_11, %c6] : memref<1x9x9x12xbf16, #tpu.memory_space<vmem>>, vector<1x8x8x3xbf16>
    %10 = vector.shape_cast %9 : vector<1x8x8x3xbf16> to vector<8x8x3xbf16>
    %11 = vector.shape_cast %10 : vector<8x8x3xbf16> to vector<64x3xbf16>
    %c0_12 = arith.constant 0 : index
    %c0_13 = arith.constant 0 : index
    %c0_14 = arith.constant 0 : index
    %c9 = arith.constant 9 : index
    %12 = vector.load %arg1[%c0_12, %c0_13, %c0_14, %c9] : memref<1x9x9x12xbf16, #tpu.memory_space<vmem>>, vector<1x8x8x3xbf16>
    %13 = vector.shape_cast %12 : vector<1x8x8x3xbf16> to vector<8x8x3xbf16>
    %14 = vector.shape_cast %13 : vector<8x8x3xbf16> to vector<64x3xbf16>
    %c0_15 = arith.constant 0 : index
    %c0_16 = arith.constant 0 : index
    %c1_17 = arith.constant 1 : index
    %c6_18 = arith.constant 6 : index
    %15 = vector.load %arg1[%c0_15, %c0_16, %c1_17, %c6_18] : memref<1x9x9x12xbf16, #tpu.memory_space<vmem>>, vector<1x8x8x3xbf16>
    %16 = vector.shape_cast %15 : vector<1x8x8x3xbf16> to vector<8x8x3xbf16>
    %17 = vector.shape_cast %16 : vector<8x8x3xbf16> to vector<64x3xbf16>
    %c0_19 = arith.constant 0 : index
    %c1_20 = arith.constant 1 : index
    %c0_21 = arith.constant 0 : index
    %c0_22 = arith.constant 0 : index
    %18 = vector.load %arg1[%c0_19, %c1_20, %c0_21, %c0_22] : memref<1x9x9x12xbf16, #tpu.memory_space<vmem>>, vector<1x8x8x3xbf16>
    %19 = vector.shape_cast %18 : vector<1x8x8x3xbf16> to vector<8x8x3xbf16>
    %20 = vector.shape_cast %19 : vector<8x8x3xbf16> to vector<64x3xbf16>
    %c0_23 = arith.constant 0 : index
    %c1_24 = arith.constant 1 : index
    %c0_25 = arith.constant 0 : index
    %c3_26 = arith.constant 3 : index
    %21 = vector.load %arg1[%c0_23, %c1_24, %c0_25, %c3_26] : memref<1x9x9x12xbf16, #tpu.memory_space<vmem>>, vector<1x8x8x3xbf16>
    %22 = vector.shape_cast %21 : vector<1x8x8x3xbf16> to vector<8x8x3xbf16>
    %23 = vector.shape_cast %22 : vector<8x8x3xbf16> to vector<64x3xbf16>
    %c0_27 = arith.constant 0 : index
    %c1_28 = arith.constant 1 : index
    %c1_29 = arith.constant 1 : index
    %c0_30 = arith.constant 0 : index
    %24 = vector.load %arg1[%c0_27, %c1_28, %c1_29, %c0_30] : memref<1x9x9x12xbf16, #tpu.memory_space<vmem>>, vector<1x8x8x3xbf16>
    %25 = vector.shape_cast %24 : vector<1x8x8x3xbf16> to vector<8x8x3xbf16>
    %26 = vector.shape_cast %25 : vector<8x8x3xbf16> to vector<64x3xbf16>
    %27 = tpu.concatenate %2, %5, %8, %11, %14, %17, %20, %23, %26 in 1 : vector<64x3xbf16>, vector<64x3xbf16>, vector<64x3xbf16>, vector<64x3xbf16>, vector<64x3xbf16>, vector<64x3xbf16>, vector<64x3xbf16>, vector<64x3xbf16>, vector<64x3xbf16> -> vector<64x27xbf16>
    %c0_31 = arith.constant 0 : index
    %c0_32 = arith.constant 0 : index
    %28 = vector.load %arg2[%c0_31, %c0_32] : memref<27x64xbf16, #tpu.memory_space<vmem>>, vector<27x64xbf16>
    %cst = arith.constant dense<0.000000e+00> : vector<64x64xf32>
    %29 = tpu.matmul %27, %28, %cst {dimension_numbers = #tpu.dot_dimension_numbers<[1], [0], [0], [1], [0, 0, 1, 1], [], []>} : vector<64x27xbf16>, vector<27x64xbf16>, vector<64x64xf32> -> vector<64x64xf32>
    %c0_33 = arith.constant 0 : index
    %c0_34 = arith.constant 0 : index
    %30 = vector.load %arg3[%c0_33, %c0_34] : memref<1x64xf32, #tpu.memory_space<vmem>>, vector<1x64xf32>
    %31 = vector.broadcast %30 : vector<1x64xf32> to vector<64x64xf32>
    %32 = arith.addf %29, %31 : vector<64x64xf32>
    %cst_35 = arith.constant 0.000000e+00 : f32
    %33 = vector.broadcast %cst_35 : f32 to vector<64x64xf32>
    %34 = arith.cmpf ogt, %32, %33 : vector<64x64xf32>
    %cst_36 = arith.constant 2.000000e-01 : f32
    %35 = vector.broadcast %cst_36 : f32 to vector<64x64xf32>
    %36 = arith.mulf %35, %32 : vector<64x64xf32>
    %37 = arith.select %34, %32, %36 : vector<64x64xi1>, vector<64x64xf32>
    %38 = vector.shape_cast %37 : vector<64x64xf32> to vector<8x8x64xf32>
    %39 = arith.truncf %38 : vector<8x8x64xf32> to vector<8x8x64xbf16>
    %c0_37 = arith.constant 0 : index
    %c0_38 = arith.constant 0 : index
    %c0_39 = arith.constant 0 : index
    %c0_40 = arith.constant 0 : index
    %40 = vector.load %arg4[%c0_37, %c0_38, %c0_39, %c0_40] : memref<1x8x8x64xbf16, #tpu.memory_space<vmem>>, vector<1x8x8x64xbf16>
    %41 = vector.shape_cast %40 : vector<1x8x8x64xbf16> to vector<8x8x64xbf16>
    %42 = vector.shape_cast %39 : vector<8x8x64xbf16> to vector<1x8x8x64xbf16>
    tpu.vector_store %arg4[%c0_37, %c0_38, %c0_39, %c0_40], %42 {strides = array<i32>} : memref<1x8x8x64xbf16, #tpu.memory_space<vmem>>, vector<1x8x8x64xbf16>,
    return
  }
  func.func @transform_0(%arg0: i32) -> (i32, i32, i32, i32) {
    %c0_i32 = arith.constant 0 : i32
    %c0_i32_0 = arith.constant 0 : i32
    %c0_i32_1 = arith.constant 0 : i32
    %c0_i32_2 = arith.constant 0 : i32
    return %arg0, %c0_i32, %c0_i32_0, %c0_i32_1 : i32, i32, i32, i32
  }
  func.func @transform_1(%arg0: i32) -> (i32, i32) {
    %c0_i32 = arith.constant 0 : i32
    %c0_i32_0 = arith.constant 0 : i32
    %c0_i32_1 = arith.constant 0 : i32
    return %c0_i32, %c0_i32_0 : i32, i32
  }
  func.func @transform_2(%arg0: i32) -> (i32, i32) {
    %c0_i32 = arith.constant 0 : i32
    %c0_i32_0 = arith.constant 0 : i32
    %c0_i32_1 = arith.constant 0 : i32
    return %c0_i32, %c0_i32_0 : i32, i32
  }
  func.func @transform_3(%arg0: i32) -> (i32, i32, i32, i32) {
    %c0_i32 = arith.constant 0 : i32
    %c0_i32_0 = arith.constant 0 : i32
    %c0_i32_1 = arith.constant 0 : i32
    %c0_i32_2 = arith.constant 0 : i32
    return %arg0, %c0_i32, %c0_i32_0, %c0_i32_1 : i32, i32, i32, i32
  }
}

</mosaic_0001>

<bundles_post_ra>
// kernel: tpu_custom_call.1
= control target key start
LH: loop header
LB: loop body
LE: loop exit
PB: predicated region body
PF: predicated region fallthrough
CT: control target
= control target key end

     0   :  { %8 = vsyncpa [#allocation3], 0  ;;  %s1676_s0 = inlined_call_operand.hbm [shape: bf16[2,9,9,12], index: 0, kind: input, shape index: {}]   ;;  %s1677_s1 = inlined_call_operand.hbm [shape: bf16[27,64], index: 1, kind: input, shape index: {}]   ;;  %s1678_s2 = inlined_call_operand.hbm [shape: f32[1,64], index: 2, kind: input, shape index: {}]   ;;  %s1679_s3 = inlined_call_operand.hbm [shape: bf16[2,8,8,64], index: 3, kind: output, shape index: {}]  }
   0x1   :  { %10 = vsyncpa [#allocation3 + $0x1], 0 }
   0x2   :  { %11 = vsyncpa [#allocation6], 0 }
   0x3   :  { %12 = vsyncpa [#allocation4], 0 }
   0x4   :  { %14 = vsyncpa [#allocation4 + $0x1], 0  ;;  %s1249_s12 = smov 0   ;;  %s1251_s13 = smov 0  }
   0x5   :  { %s1253_s14 = smov 0   ;;  %s1255_s15 = smov 0  }
   0x6 LB: > { %s1270_s16 = sadd.s32 4294967295, %s1213_s15   ;;  %s890_s17 = sadd.s32 4294967294, %s1213_s15   ;;  %s1213_s15 = sphi %s1255_s15, %s1701_s15   ;;  %s1209_s14 = sphi %s1253_s14, %s1700_s14   ;;  %s1205_s13 = sphi %s1251_s13, %s1699_s13   ;;  %s1201_s12 = sphi %s1249_s12, %s1698_s12  }
   0x7   : > { %p40_p0 = scmp.ne.s32.totalorder %s1205_s13, %s1201_s12  ;;  %p1680_p1 = scmp.eq.s32.totalorder %s1270_s16, 0 }
   0x8   : > { %p112_p3 = scmp.eq.s32.totalorder %s890_s17, 1  ;;  %p891_p5 = scmp.ge.s32.totalorder %s1213_s15, 1 }
   0x9   : > { %p1279_p4 = por %p1680_p1, %p40_p0  ;;  %p119_p7 = scmp.lt.s32.totalorder %s1213_s15, 3 }
   0xa   : > { %p1284_p6 = por %p112_p3, %p40_p0  ;;  %s1215_s21 = smov [#allocation5]  }
   0xb   : > { %s1683_s18 = scalar_select %p1279_p4, 1, 0 }
   0xc   : > { %s1684_s19 = scalar_select %p1284_p6, 1, 0 }
   0xd   : > { %p1289_p8 = pnand %p891_p5, %p119_p7  ;;  %s131_s22 = sshll.u32 %s1215_s21, 4  ;;  %s1293_s22 = int_to_ptr.vmem [resolvable:$true] %s131_s22 }
   0xe   : > { %s1216_s24 = smov [#allocation7]   ;;  %s1057_s28 = scalar_lea.hbm %s1677_s1, 256 }
   0xf   : > { %p982_p9 = pneg %p1289_p8  ;;  %s145_s25 = sshll.u32 %s1216_s24, 4  ;;  %s1304_s25 = int_to_ptr.vmem [resolvable:$true] %s145_s25 }
  0x10   : > { %p1058_p12 = scmp.ne.s32.totalorder %s1677_s1, %s1057_s28  ;;  %p1064_p5 = scmp.lt.u32.totalorder %s1057_s28, %s1677_s1 }
  0x11   : > { %p1300_p11 = pnand %p982_p9, %p1680_p1 }
  0x13   : > { %p1059_p13 = pneg %p1300_p11 }
  0x15   : > { %p1060_p0 = pnand %p1059_p13, %p1058_p12 }
  0x17   : > { %p1061_p3 = pneg %p1060_p0 }
  0x19   : > { %p1066_p7 = pnand %p1064_p5, %p1061_p3 }
  0x1b   : > { %1069 = shalt.err (!%p1066_p7)
}
  0x1c   : > { %s1070_s6 = scalar_lea.vmem %s1293_s22, 256  ;;  %p1078_p2 = scmp.lt.s32.totalorder %s1293_s22, %s1293_s22 }
  0x1d   : > { %p1071_p9 = scmp.ne.s32.totalorder %s1293_s22, %s1070_s6  ;;  %p1079_p12 = scmp.lt.s32.totalorder %s1070_s6, %s1070_s6 }
  0x1f   : > { %p1073_p10 = pnand %p1071_p9, %p1059_p13  ;;  %p1080_p0 = por %p1079_p12, %p1078_p2 }
  0x21   : > { %p1074_p1 = pneg %p1073_p10 }
  0x23   : > { %p1081_p6 = pnand %p1080_p0, %p1074_p1 }
  0x25   : > { %1084 = shalt.err (!%p1081_p6)
}
  0x26   : > { %s1217_s7 = smov 64   ;;  %s1218_s8 = smov 4  }
  0x27   : > { %985 = dma.hbm_to_vmem [thread:$0]  (!%p1300_p11), %s1677_s1, 256, %s1293_s22, [#allocation6], %s1217_s7, %s1217_s7, %s1218_s8  }
  0x28   : > { %s1085_s21 = scalar_lea.hbm %s1678_s2, 16 }
  0x29   : > { %p1086_p1 = scmp.ne.s32.totalorder %s1678_s2, %s1085_s21  ;;  %p1092_p10 = scmp.lt.u32.totalorder %s1085_s21, %s1678_s2 }
  0x2b   : > { %p1088_p2 = pnand %p1086_p1, %p1059_p13 }
  0x2d   : > { %p1089_p6 = pneg %p1088_p2 }
  0x2f   : > { %p1094_p3 = pnand %p1092_p10, %p1089_p6 }
  0x31   : > { %1097 = shalt.err (!%p1094_p3)
}
  0x32   : > { %s1098_s22 = scalar_lea.vmem %s1304_s25, 16  ;;  %s1105_s29 = scalar_lea.vmem %s1304_s25, 32 }
  0x33   : > { %p1099_p5 = scmp.ne.s32.totalorder %s1304_s25, %s1098_s22  ;;  %p1106_p12 = scmp.lt.s32.totalorder %s1304_s25, %s1304_s25 }
  0x34   : > { %p1107_p0 = scmp.lt.s32.totalorder %s1105_s29, %s1098_s22 }
  0x35   : > { %p1101_p7 = pnand %p1099_p5, %p1059_p13 }
  0x36   : > { %p1108_p1 = por %p1107_p0, %p1106_p12 }
  0x37   : > { %p1102_p9 = pneg %p1101_p7 }
  0x39   : > { %p1109_p2 = pnand %p1108_p1, %p1102_p9 }
  0x3b   : > { %1112 = shalt.err (!%p1109_p2)
}
  0x3c   : > { %988 = dma.hbm_to_vmem [thread:$0]  (!%p1300_p11), %s1678_s2, 16, %s1304_s25, [#allocation6]  }
  0x3d   : > { %s1363_s5 = sadd.s32 1, %s1213_s15   ;;  %s27_s23 = sadd.s32 1, %s1209_s14 }
  0x3e   : > { %s24_s6 = ssub.s32 %s1213_s15, %s1363_s5  ;;  %p34_p13 = scmp.ne.s32.totalorder %s1209_s14, %s1205_s13 }
  0x3f   : > { %p25_p6 = scmp.eq.s32.totalorder %s24_s6, 0  ;;  %p35_p10 = scmp.eq.s32.totalorder %s1213_s15, 0 }
  0x40   : > { %p1687_p3 = scmp.eq.s32.totalorder %s1270_s16, 1  ;;  %p999_p7 = scmp.lt.s32.totalorder %s1213_s15, 2 }
  0x41   : > { %s1379_s10 = scalar_select %p25_p6, %s1209_s14, %s27_s23  }
  0x42   : > { %p1373_p5 = por %p1687_p3, %p34_p13  ;;  %p36_p9 = por %p35_p10, %p34_p13 }
  0x43   : > { %s156_s11 = sand.u32 1, %s1209_s14   ;;  %s968_s25 = smul.u32 1152, %s1213_s15 }
  0x44   : > { %s1688_s9 = scalar_select %p1373_p5, 1, 0 }
  0x45   : > { %s967_s17 = smul.u32 72, %s156_s11  ;;  %p1383_p11 = pnand %p999_p7, %p36_p9 }
  0x46   : > { %s1390_s27 = scalar_lea.hbm %s1676_s0, %s968_s25  ;;  %s1394_s29 = scalar_lea.sflag [#allocation3], %s156_s11 }
  0x47   : > { %s160_s28 = scalar_lea.vmem [#allocation2], %s967_s17  ;;  %s1113_s30 = scalar_lea.hbm %s1390_s27, 1152 }
  0x48   : > { %s167_s22 = sshll.u32 %s160_s28, 4  ;;  %p1114_p12 = scmp.ne.s32.totalorder %s1390_s27, %s1113_s30  ;;  %s1392_s22 = int_to_ptr.vmem [resolvable:$true] %s167_s22 }
  0x49   : > { %p1115_p0 = pneg %p1383_p11  ;;  %s1118_s6 = scalar_lea.hbm %s1676_s0, 2304 }
  0x4a   : > { %p1119_p13 = scmp.lt.u32.totalorder %s1390_s27, %s1676_s0  ;;  %p1120_p6 = scmp.lt.u32.totalorder %s1118_s6, %s1113_s30 }
  0x4b   : > { %p1116_p1 = pnand %p1115_p0, %p1114_p12  ;;  %p1122_p3 = scmp.lt.u32.totalorder %s1113_s30, %s1390_s27 }
  0x4c   : > { %p1121_p10 = por %p1120_p6, %p1119_p13 }
  0x4d   : > { %p1117_p2 = pneg %p1116_p1 }
  0x4e   : > { %p1123_p7 = por %p1122_p3, %p1121_p10 }
  0x50   : > { %p1124_p9 = pnand %p1123_p7, %p1117_p2 }
  0x52   : > { %1127 = shalt.err (!%p1124_p9)
}
  0x53   : > { %s1128_s11 = scalar_lea.vmem %s1392_s22, 1152  ;;  %s1219_s17 = smov [#allocation2]  }
  0x54   : > { %p1129_p12 = scmp.ne.s32.totalorder %s1392_s22, %s1128_s11  ;;  %s1133_s26 = sshll.u32 %s1219_s17, 4  ;;  %s1134_s26 = int_to_ptr.vmem [resolvable:$false] %s1133_s26 }
  0x55   : > { %s1135_s28 = scalar_lea.vmem %s1134_s26, 2304  ;;  %p1136_p4 = scmp.lt.s32.totalorder %s1392_s22, %s1134_s26 }
  0x56   : > { %p1131_p1 = pnand %p1129_p12, %p1115_p0  ;;  %p1137_p13 = scmp.lt.s32.totalorder %s1135_s28, %s1128_s11 }
  0x58   : > { %p1132_p5 = pneg %p1131_p1  ;;  %p1138_p6 = por %p1137_p13, %p1136_p4 }
  0x5a   : > { %p1139_p10 = pnand %p1138_p6, %p1132_p5 }
  0x5c   : > { %1142 = shalt.err (!%p1139_p10)
}
  0x5d   : > { %992 = dma.hbm_to_vmem [thread:$0]  (!%p1383_p11), %s1390_s27, 1152, %s1392_s22, %s1394_s29, %s1217_s7, %s1217_s7, %s1218_s8  }
  0x5e   : > { %179 = sbr.rel (%p1289_p8) target bundleno = 513 (0x201), region = 32  ;;  %s1428_s30 = sand.u32 (!%p1289_p8), 1, %s1205_s13  }
  0x5f   : > { %s969_s4 = smul.u32 (!%p1289_p8), 72, %s1428_s30  ;;  %s182_s23 = scalar_lea.sflag (!%p1289_p8), [#allocation3], %s1428_s30 }
  0x60   : > { %p1690_p4 = scmp.ne.s32.totalorder (!%p1289_p8), %s1683_s18, 0 }
  0x61   : > { %s1432_s6 = scalar_lea.vmem (!%p1289_p8), [#allocation2], %s969_s4 }
  0x65   : > { %1188 = dma.done.wait (%p1690_p4), %s182_s23, 1152  }
  0x66   : > { %1190 = vsyncadd (%p1690_p4), %s182_s23, 4294966144  ;;  %p1691_p5 = scmp.eq.s32.totalorder %s1270_s16, 0 }
  0x68   : > { %1192 = dma.done.wait (%p1691_p5), [#allocation6], 272   ;;  %p1692_p8 = pmov %p1691_p5 }
  0x69   : > { %v221_v0 = vld [vmem:[%s1432_s6 + $0x20] sm:$0xf]  ;;  %v222_v1 = vld [vmem:[%s1432_s6 + $0x28] sm:$0xf]  ;;  %v223_v12 = vld [vmem:[%s1432_s6 + $0x30] sm:$0xf] }
  0x6a   : > { %1194 = vsyncadd (%p1692_p8), [#allocation6], 4294967024  ;;  %v217_v2 = vld [vmem:[%s1432_s6] sm:$0xf]  ;;  %v307_v3 = vshrl.u32 %v222_v1, 16  ;;  %v310_v4 = vshll.u32 %v222_v1, 16  ;;  %v1445_v5 = vcombine.low %v221_v0, %v222_v1 }
  0x6b   : > { %v293_v6 = vshrl.u32 %v221_v0, 16  ;;  %v218_v7 = vld [vmem:[%s1432_s6 + $0x8] sm:$0xf]  ;;  %v296_v8 = vshll.u32 %v221_v0, 16  ;;  %vm233_vm0 = vsmask.f32 3328 }
  0x6c   : > { %v251_v9 = vshrl.u32 %v218_v7, 16  ;;  %v254_v10 = vshll.u32 %v218_v7, 16  ;;  %v1448_v11 = vcombine.low %v217_v2, %v218_v7  ;;  %vm234_vm1 = vsmask.f32 7440  ;;  %s1220_s18 = smov 3   ;;  %s1221_s20 = smov 6  }
  0x6d   : > { %v309_v13 = vrot.slane %v307_v3, 4  ;;  %v312_v14 = vrot.slane %v310_v4, 5  ;;  %521 = vrot.lane.b32.xlu1 %v1445_v5, %s1220_s18  ;;  %v295_v15 = vrot.slane %v293_v6, 4  ;;  %v237_v16 = vshrl.u32 %v217_v2, 16  ;;  %v224_v17 = vld [vmem:[%s1432_s6 + $0x38] sm:$0xf]  ;;  %vm1478_vm2 = vmor %vm233_vm0, %vm234_vm1 }
  0x6e   : > { %v298_v18 = vrot.slane %v296_v8, 5  ;;  %v253_v19 = vrot.slane %v251_v9, 4  ;;  %v256_v20 = vrot.slane %v254_v10, 5  ;;  %517 = vrot.lane.b32.xlu0 %v1448_v11, %s1220_s18  ;;  %v240_v21 = vshll.u32 %v217_v2, 16  ;;  %v219_v26 = vld [vmem:[%s1432_s6 + $0x10] sm:$0xf] }
  0x6f   : > { %v313_v22 = vor.u32 %v312_v14, %v309_v13  ;;  %v239_v23 = vrot.slane %v237_v16, 4  ;;  %v321_v24 = vshrl.u32 %v223_v12, 16  ;;  %v324_v25 = vshll.u32 %v223_v12, 16  ;;  %v220_v31 = vld [vmem:[%s1432_s6 + $0x18] sm:$0xf]  ;;  %s1222_s7 = smov 9  }
  0x70   : > { %v299_v27 = vor.u32 %v298_v18, %v295_v15  ;;  %v257_v28 = vor.u32 %v256_v20, %v253_v19  ;;  %v242_v29 = vrot.slane %v240_v21, 5  ;;  %v335_v30 = vshrl.u32 %v224_v17, 16  ;;  %v227_v32 = vld [vmem:[%s1432_s6 + $0x14] sm:$0x1]  ;;  %v228_v37 = vld [vmem:[%s1432_s6 + $0x1c] sm:$0x1] }
  0x71   : > { %v1459_v33 = vrot.slane %v313_v22, 4  ;;  %v323_v34 = vrot.slane %v321_v24, 4  ;;  %v326_v35 = vrot.slane %v324_v25, 5  ;;  %v338_v36 = vshll.u32 %v224_v17, 16  ;;  %v225_v42 = vld [vmem:[%s1432_s6 + $0x4] sm:$0x1] }
  0x72   : > { %v1462_v38 = vrot.slane %v299_v27, 4  ;;  %v258_v39 = vrot.slane %v257_v28, 4  ;;  %v243_v40 = vor.u32 %v242_v29, %v239_v23  ;;  %v337_v41 = vrot.slane %v335_v30, 4  ;;  %v226_v47 = vld [vmem:[%s1432_s6 + $0xc] sm:$0x1]  ;;  %s1223_s8 = smov 18  }
  0x73   : > { %v340_v43 = vrot.slane %v338_v36, 5  ;;  %v1465_v44 = vcombine.low %v223_v12, %v224_v17  ;;  %v265_v45 = vshrl.u32 %v219_v26, 16  ;;  %v268_v46 = vshll.u32 %v219_v26, 16  ;;  %v231_v56 = vld [vmem:[%s1432_s6 + $0x34] sm:$0x1]  ;;  %s1225_s21 = smov 24  }
  0x74   : > { %v244_v48 = vrot.slane %v243_v40, 4  ;;  %v279_v49 = vshrl.u32 %v220_v31, 16  ;;  %v282_v50 = vshll.u32 %v220_v31, 16  ;;  %v1468_v51 = vcombine.low %v219_v26, %v220_v31  ;;  %v232_v61 = vld [vmem:[%s1432_s6 + $0x3c] sm:$0x1]  ;;  %s899_s27 = sshll.u32 %s1428_s30, 5 }
  0x75   : > { %523 = vrot.lane.b32.xlu1 %v1465_v44, %s1220_s18  ;;  %v267_v52 = vrot.slane %v265_v45, 4  ;;  %v270_v53 = vrot.slane %v268_v46, 5  ;;  %v274_v54 = vshll.u32 %v227_v32, 16  ;;  %v288_v55 = vshll.u32 %v228_v37, 16  ;;  %v229_v8 = vld [vmem:[%s1432_s6 + $0x24] sm:$0x1] }
  0x76   : > { %v281_v57 = vrot.slane %v279_v49, 4  ;;  %v284_v58 = vrot.slane %v282_v50, 5  ;;  %519 = vrot.lane.b32.xlu0 %v1468_v51, %s1220_s18  ;;  %v246_v59 = vshll.u32 %v225_v42, 16  ;;  %v260_v60 = vshll.u32 %v226_v47, 16  ;;  %v230_v14 = vld [vmem:[%s1432_s6 + $0x2c] sm:$0x1] }
  0x77   : > { %v271_v63 = vor.u32 %v270_v53, %v267_v52  ;;  %v276_v0 = vrot.slane %v274_v54, 5  ;;  %v290_v1 = vrot.slane %v288_v55, 5  ;;  %v327_v2 = vor.u32 %v326_v35, %v323_v34  ;;  %v1489_v19 = vld [vmem:[%s1432_s6 + $0x28] sm:$0xf]  ;;  %v1494_v24 = vld [vmem:[%s1432_s6 + $0x30] sm:$0xf] }
  0x78   : > { %v285_v3 = vor.u32 %v284_v58, %v281_v57  ;;  %v248_v4 = vrot.slane %v246_v59, 5  ;;  %v262_v6 = vrot.slane %v260_v60, 5  ;;  %v330_v7 = vshll.u32 %v231_v56, 16  ;;  %v1508_v34 = vld [vmem:[%s1432_s6 + $0x8] sm:$0xf]  ;;  %s215_s22 = scalar_lea.vmem [#allocation8], %s899_s27 }
  0x79   : > { %v272_v9 = vrot.slane %v271_v63, 4  ;;  %v328_v10 = vrot.slane %v327_v2, 4  ;;  %v341_v12 = vor.u32 %v340_v43, %v337_v41  ;;  %v344_v13 = vshll.u32 %v232_v61, 16  ;;  %v1520_v42 = vld [vmem:[%s1432_s6 + $0x38] sm:$0xf]  ;;  %s944_s29 = sshll.u32 %s1270_s16, 9 }
  0x7a   : > { %v286_v15 = vrot.slane %v285_v3, 4  ;;  %v249_v16 = vsel %vm1478_vm2, %v244_v48, %v248_v4  ;;  %v263_v17 = vsel %vm1478_vm2, %v258_v39, %v262_v6  ;;  %v332_v18 = vrot.slane %v330_v7, 5  ;;  %v1512_v39 = vld [vmem:[%s1432_s6 + $0x10] sm:$0xf]  ;;  %v1530_v48 = vld [vmem:[%s1432_s6 + $0x40] sm:$0xf]  ;;  %s1628_s17 = scalar_lea.hbm %s1679_s3, %s944_s29 }
  0x7b   : > { %v277_v20 = vsel %vm1478_vm2, %v272_v9, %v276_v0  ;;  %v920_v21 = vcombine.low %v249_v16, %v263_v17  ;;  %v342_v22 = vrot.slane %v341_v12, 4  ;;  %v346_v23 = vrot.slane %v344_v13, 5  ;;  %v1533_v49 = vld [vmem:[%s1432_s6 + $0x18] sm:$0xf]  ;;  %v1538_v55 = vld [vmem:[%s1432_s6 + $0x20] sm:$0xf] }
  0x7c   : > { %v291_v25 = vsel %vm1478_vm2, %v286_v15, %v290_v1  ;;  %v333_v26 = vsel %vm1478_vm2, %v328_v10, %v332_v18  ;;  %v302_v27 = vshll.u32 %v229_v8, 16  ;;  %v316_v28 = vshll.u32 %v230_v14, 16  ;;  %v912_v58 = vld [vmem:[%s1432_s6 + $0x2c] sm:$0x1]  ;;  %v913_v0 = vld [vmem:[%s1432_s6 + $0x34] sm:$0x1] }
  0x7d   : > { %v1500_v29 = vcombine.low %v277_v20, %v291_v25  ;;  %509 = vrot.lane.b32.xlu0 %v920_v21, %s1221_s20  ;;  %v347_v30 = vsel %vm1478_vm2, %v342_v22, %v346_v23  ;;  %v422_v31 = vshrl.u32 %v1489_v19, 16  ;;  %v425_v32 = vshll.u32 %v1489_v19, 16  ;;  %v1055_v10 = vld [vmem:[#allocation5] sm:$0xff]   ;;  %s798_s25 = sshll.u32 %s215_s22, 4  ;;  %s785_s16 = scalar_lea.sflag [#allocation4], %s1428_s30  ;;  %s1630_s25 = int_to_ptr.vmem [resolvable:$true] %s798_s25 }
  0x7e   : > { %v304_v35 = vrot.slane %v302_v27, 5  ;;  %v318_v36 = vrot.slane %v316_v28, 5  ;;  %v436_v37 = vshrl.u32 %v1494_v24, 16  ;;  %v1516_v40 = vcombine.low %v333_v26, %v347_v30  ;;  %v908_v16 = vld [vmem:[%s1432_s6 + $0xc] sm:$0x1]  ;;  %951 = vmatprep.subr.bf16.mxu0 %v1055_v10  ;;  %963 = vmatprep.subr.bf16.mxu1 %v1055_v10  ;;  %s1143_s26 = scalar_lea.vmem %s1630_s25, 512 }
  0x7f   : > { %511 = vrot.lane.b32.xlu1 %v1500_v29, %s1221_s20  ;;  %v439_v41 = vshll.u32 %v1494_v24, 16  ;;  %v424_v46 = vrot.slane %v422_v31, 4  ;;  %v366_v47 = vshrl.u32 %v1508_v34, 16  ;;  %v427_v52 = vrot.slane %v425_v32, 5  ;;  %v909_v23 = vld [vmem:[%s1432_s6 + $0x14] sm:$0x1]  ;;  %952 = vmatpush3.bf16.msra.mxu0 %v1055_v10  ;;  %p1144_p11 = scmp.ne.s32.totalorder %s1630_s25, %s1143_s26 }
  0x80   : > { %v305_v43 = vsel %vm1478_vm2, %v1462_v38, %v304_v35  ;;  %v319_v45 = vsel %vm1478_vm2, %v1459_v33, %v318_v36  ;;  %v369_v53 = vshll.u32 %v1508_v34, 16  ;;  %v380_v54 = vshrl.u32 %v1512_v39, 16  ;;  %v914_v35 = vld [vmem:[%s1432_s6 + $0x3c] sm:$0x1]  ;;  %965 = vmatpush3.bf16.msra.mxu1 %v1055_v10  ;;  %p1695_p0 = scmp.ne.s32.totalorder %s1688_s9, 0  ;;  %s1226_s28 = smov [#allocation8]  }
  0x81   : > { %v922_v50 = vcombine.low %v305_v43, %v319_v45  ;;  %v438_v38 = vrot.slane %v436_v37, 4  ;;  %v926_v33 = vcombine.low %v1489_v19, %v1494_v24  ;;  %v383_v56 = vshll.u32 %v1512_v39, 16  ;;  %v1056_v24 = vld [vmem:[#allocation5 + $0x8] sm:$0x3f]   ;;  %s1147_s4 = sshll.u32 %s1226_s28, 4  ;;  %s1148_s4 = int_to_ptr.vmem [resolvable:$false] %s1147_s4 }
  0x82   : > { %v450_v57 = vshrl.u32 %v1520_v42, 16  ;;  %v441_v59 = vrot.slane %v439_v41, 5  ;;  %v368_v60 = vrot.slane %v366_v47, 4  ;;  %v453_v61 = vshll.u32 %v1520_v42, 16  ;;  %p1145_p2 = pnand %p1144_p11, %p1695_p0  ;;  %s1149_s23 = scalar_lea.vmem %s1148_s4, 1024 }
  0x83   : > { %515 = vrot.lane.b32.xlu1 %v1516_v40, %s1221_s20  ;;  %513 = vrot.lane.b32.xlu0 %v922_v50, %s1221_s20  ;;  %v464_v63 = vshrl.u32 %v1530_v48, 16  ;;  %v371_v1 = vrot.slane %v369_v53, 5  ;;  %v382_v2 = vrot.slane %v380_v54, 4  ;;  %v924_v3 = vcombine.low %v1508_v34, %v1512_v39  ;;  %p1150_p7 = scmp.lt.s32.totalorder %s1630_s25, %s1148_s4  ;;  %p1151_p9 = scmp.lt.s32.totalorder %s1149_s23, %s1143_s26 }
  0x84   : > { %v467_v4 = vshll.u32 %v1530_v48, 16  ;;  %v385_v6 = vrot.slane %v383_v56, 5  ;;  %v452_v7 = vrot.slane %v450_v57, 4  ;;  %v394_v8 = vshrl.u32 %v1533_v49, 16  ;;  %p1146_p3 = pneg %p1145_p2 }
  0x85   : > { %v397_v9 = vshll.u32 %v1533_v49, 16  ;;  %v455_v12 = vrot.slane %v453_v61, 5  ;;  %v466_v13 = vrot.slane %v464_v63, 4  ;;  %v408_v15 = vshrl.u32 %v1538_v55, 16  ;;  %p1152_p12 = por %p1151_p9, %p1150_p7 }
  0x86   : > { %v469_v14 = vrot.slane %v467_v4, 5  ;;  %v396_v17 = vrot.slane %v394_v8, 4  ;;  %v411_v18 = vshll.u32 %v1538_v55, 16  ;;  %v428_v20 = vor.u32 %v427_v52, %v424_v46  ;;  %v915_v46 = vld [vmem:[%s1432_s6 + $0x44] sm:$0x1] }
  0x87   : > { %529 = vrot.lane.b32.xlu1 %v922_v50, %s1222_s7  ;;  %525 = vrot.lane.b32.xlu0 %v920_v21, %s1222_s7  ;;  %v431_v22 = vshll.u32 %v912_v58, 16  ;;  %v399_v25 = vrot.slane %v397_v9, 5  ;;  %v410_v26 = vrot.slane %v408_v15, 4  ;;  %v442_v27 = vor.u32 %v441_v59, %v438_v38  ;;  %v910_v38 = vld [vmem:[%s1432_s6 + $0x1c] sm:$0x1]  ;;  %p1153_p1 = pnand %p1152_p12, %p1146_p3 }
  0x88   : > { %v445_v28 = vshll.u32 %v913_v0, 16  ;;  %v429_v30 = vrot.slane %v428_v20, 4  ;;  %v372_v32 = vor.u32 %v371_v1, %v368_v60  ;;  %v375_v34 = vshll.u32 %v908_v16, 16  ;;  %v911_v58 = vld [vmem:[%s1432_s6 + $0x24] sm:$0x1] }
  0x89   : > { %v433_v31 = vrot.slane %v431_v22, 5  ;;  %v443_v21 = vrot.slane %v442_v27, 4  ;;  %v386_v37 = vor.u32 %v385_v6, %v382_v2  ;;  %v389_v39 = vshll.u32 %v909_v23, 16 }
  0x8a   : > { %v447_v36 = vrot.slane %v445_v28, 5  ;;  %v413_v41 = vrot.slane %v411_v18, 5  ;;  %v373_v43 = vrot.slane %v372_v32, 4  ;;  %v377_v45 = vrot.slane %v375_v34, 5 }
  0x8b   : > { %531 = vrot.lane.b32.xlu1 %v1516_v40, %s1222_s7  ;;  %527 = vrot.lane.b32.xlu0 %v1500_v29, %s1222_s7  ;;  %v456_v47 = vor.u32 %v455_v12, %v452_v7  ;;  %v927_v50 = vcombine.low %v1520_v42, %v1530_v48  ;;  %v387_v52 = vrot.slane %v386_v37, 4  ;;  %v391_v53 = vrot.slane %v389_v39, 5 }
  0x8c   : > { %v459_v54 = vshll.u32 %v914_v35, 16  ;;  %v925_v56 = vcombine.low %v1533_v49, %v1538_v55  ;;  %v434_v40 = vsel %vm1478_vm2, %v429_v30, %v433_v31  ;;  %v448_v29 = vsel %vm1478_vm2, %v443_v21, %v447_v36 }
  0x8d   : > { %v470_v57 = vor.u32 %v469_v14, %v466_v13  ;;  %v378_v59 = vsel %vm1478_vm2, %v373_v43, %v377_v45  ;;  %v457_v60 = vrot.slane %v456_v47, 4  ;;  %v473_v42 = vshll.u32 %v915_v46, 16 }
  0x8e   : > { %v400_v48 = vor.u32 %v399_v25, %v396_v17  ;;  %v392_v49 = vsel %vm1478_vm2, %v387_v52, %v391_v53  ;;  %v461_v55 = vrot.slane %v459_v54, 5  ;;  %v403_v61 = vshll.u32 %v910_v38, 16 }
  0x8f   : > { %557 = vrot.lane.b32.xlu1 %v926_v33, %s1223_s8  ;;  %553 = vrot.lane.b32.xlu0 %v924_v3, %s1223_s8  ;;  %v414_v63 = vor.u32 %v413_v41, %v410_v26  ;;  %v471_v0 = vrot.slane %v470_v57, 4  ;;  %v475_v1 = vrot.slane %v473_v42, 5  ;;  %v417_v4 = vshll.u32 %v911_v58, 16 }
  0x90   : > { %v401_v2 = vrot.slane %v400_v48, 4  ;;  %v405_v6 = vrot.slane %v403_v61, 5  ;;  %v930_v8 = vcombine.low %v434_v40, %v448_v29  ;;  %v928_v10 = vcombine.low %v378_v59, %v392_v49 }
  0x91   : > { %v415_v7 = vrot.slane %v414_v63, 4  ;;  %v419_v9 = vrot.slane %v417_v4, 5  ;;  %v462_v19 = vsel %vm1478_vm2, %v457_v60, %v461_v55  ;;  %vm671_vm3 = vcmask 1044480  }
  0x92   : > { %vm672_vm4 = vcmask 1045504   ;;  %v476_v33 = vsel %vm1478_vm2, %v471_v0, %v475_v1  ;;  %v406_v3 = vsel %vm1478_vm2, %v401_v2, %v405_v6  ;;  %v1224_v13 = vmov 65535   ;;  %v932_v6 = vld [vmem:[#allocation7] ss:$0 sm:$0xff] }
  0x93   : > { %559 = vrot.lane.b32.xlu1 %v927_v50, %s1223_s8  ;;  %555 = vrot.lane.b32.xlu0 %v925_v56, %s1223_s8  ;;  %v420_v12 = vsel %vm1478_vm2, %v415_v7, %v419_v9  ;;  %v673_v14 = vsel %vm671_vm3, 4294967295, %v1224_v13  ;;  %v931_v16 = vcombine.low %v462_v19, %v476_v33  ;;  %vm585_vm5 = vcmask 48128  }
  0x94   : > { %v674_v15 = vsel %vm672_vm4, %v673_v14, 0  ;;  %v929_v17 = vcombine.low %v406_v3, %v420_v12  ;;  %vm594_vm6 = vcmask 72704   ;;  %vm603_vm7 = vcmask 97280  }
  0x95   : > { %v676_v18 = vand.u32 %v1056_v24, %v674_v15  ;;  %vm608_vm8 = vcmask 121856   ;;  %vm617_vm9 = vcmask 146432   ;;  %vm626_vm10 = vcmask 171008  }
  0x96   : > { %vm631_vm11 = vcmask 195584   ;;  %vm662_vm12 = vcmask 220160   ;;  %vm775_vm13 = vcmask 519168  }
  0x97   : > { %577 = vrot.lane.b32.xlu1 %v930_v8, %s1225_s21  ;;  %573 = vrot.lane.b32.xlu0 %v928_v10, %s1225_s21 }
  0x98   : > { %953 = vmatprep.subr.bf16.mxu0 %v676_v18  ;;  %964 = vmatprep.subr.bf16.mxu1 %v676_v18 }
  0x99   : > { %954 = vmatpush3.bf16.msra.mxu0 %v676_v18  ;;  %966 = vmatpush3.bf16.msra.mxu1 %v676_v18 }
  0x9b   : > { %579 = vrot.lane.b32.xlu1 %v931_v16, %s1225_s21  ;;  %575 = vrot.lane.b32.xlu0 %v929_v17, %s1225_s21 }
  0xdf   : > { %v522_v22 = vpop.permute.xlu1 %521 }
  0xe0   : > { %v518_v20 = vpop.permute.xlu0 %517 }
  0xe7   : > { %v524_v62 = vpop.permute.xlu1 %523 }
  0xe8   : > { %v520_v23 = vpop.permute.xlu0 %519 }
  0xef   : > { %v510_v25 = vpop.permute.xlu0 %509 }
  0xf0   : > { %v587_v21 = vsel %vm585_vm5, %v1448_v11, %v510_v25 }
  0xf1   : > { %v512_v26 = vpop.permute.xlu1 %511  ;;  %v596_v37 = vsel %vm594_vm6, %v587_v21, %v518_v20 }
  0xf2   : > { %v589_v43 = vsel %vm585_vm5, %v1468_v51, %v512_v26 }
  0xf3   : > { %v598_v47 = vsel %vm594_vm6, %v589_v43, %v520_v23 }
  0xf4   : > { %v605_v56 = vsel %vm603_vm7, %v598_v47, %v520_v23 }
  0xf5   : > { %v516_v27 = vpop.permute.xlu1 %515  ;;  %v514_v28 = vpop.permute.xlu0 %513 }
  0xf6   : > { %v591_v32 = vsel %vm585_vm5, %v1445_v5, %v514_v28  ;;  %v593_v45 = vsel %vm585_vm5, %v1465_v44, %v516_v27  ;;  %v604_v5 = vsel %vm603_vm7, %v596_v37, %v518_v20 }
  0xf7   : > { %v600_v36 = vsel %vm594_vm6, %v591_v32, %v522_v22  ;;  %v602_v50 = vsel %vm594_vm6, %v593_v45, %v524_v62 }
  0xf8   : > { %v606_v46 = vsel %vm603_vm7, %v600_v36, %v522_v22  ;;  %v607_v44 = vsel %vm603_vm7, %v602_v50, %v524_v62 }
  0xf9   : > { %v530_v30 = vpop.permute.xlu1 %529  ;;  %v526_v31 = vpop.permute.xlu0 %525 }
  0xfa   : > { %v614_v52 = vsel %vm608_vm8, %v606_v46, %v530_v30  ;;  %v610_v11 = vsel %vm608_vm8, %v604_v5, %v526_v31 }
  0xfd   : > { %v532_v34 = vpop.permute.xlu1 %531  ;;  %v528_v35 = vpop.permute.xlu0 %527 }
  0xfe   : > { %v616_v40 = vsel %vm608_vm8, %v607_v44, %v532_v34  ;;  %v612_v29 = vsel %vm608_vm8, %v605_v56, %v528_v35 }
 0x101   : > { %v558_v39 = vpop.permute.xlu1 %557  ;;  %v554_v41 = vpop.permute.xlu0 %553 }
 0x102   : > { %v623_v38 = vsel %vm617_vm9, %v614_v52, %v558_v39  ;;  %v619_v51 = vsel %vm617_vm9, %v610_v11, %v554_v41 }
 0x103   : > { %v629_v57 = vsel %vm626_vm10, %v623_v38, %v558_v39  ;;  %v627_v58 = vsel %vm626_vm10, %v619_v51, %v554_v41 }
 0x105   : > { %v560_v53 = vpop.permute.xlu1 %559  ;;  %v556_v54 = vpop.permute.xlu0 %555 }
 0x106   : > { %v625_v42 = vsel %vm617_vm9, %v616_v40, %v560_v53  ;;  %v621_v48 = vsel %vm617_vm9, %v612_v29, %v556_v54 }
 0x107   : > { %v630_v61 = vsel %vm626_vm10, %v625_v42, %v560_v53  ;;  %v628_v63 = vsel %vm626_vm10, %v621_v48, %v556_v54 }
 0x109   : > { %v578_v59 = vpop.permute.xlu1 %577  ;;  %v574_v60 = vpop.permute.xlu0 %573 }
 0x10a   : > { %v633_v49 = vsel %vm631_vm11, %v627_v58, %v574_v60  ;;  %v637_v55 = vsel %vm631_vm11, %v629_v57, %v578_v59 }
 0x10b   : > { %955 = vmatprep.mubr.msk.bf16.mxu0 %vm662_vm12, %v633_v49  ;;  %959 = vmatprep.mubr.msk.bf16.mxu1 %vm662_vm12, %v637_v55 }
 0x10d   : > { %v580_v0 = vpop.permute.xlu1 %579  ;;  %v576_v1 = vpop.permute.xlu0 %575 }
 0x10e   : > { %v639_v2 = vsel %vm631_vm11, %v630_v61, %v580_v0  ;;  %v635_v4 = vsel %vm631_vm11, %v628_v63, %v576_v1 }
 0x10f   : > { %956 = vmatmul.mubr.msk.bf16.vlgmr.msra.gmra.mrb[0].mxu0 %vm662_vm12, %v635_v4  ;;  %960 = vmatmul.mubr.msk.bf16.vlgmr.msra.gmra.mrb[0].mxu1 %vm662_vm12, %v639_v2 }
 0x1e2   : > { %v957_v7 = vpop.f32.mrb[0].mxu0  ;;  %v961_v8 = vpop.f32.mrb[0].mxu1 }
 0x1e3   : > { %v721_v9 = vadd.f32 %v957_v7, %v932_v6  ;;  %v737_v10 = vadd.f32 %v961_v8, %v932_v6  ;;  %v712_v19 = vpop.f32.mrb[1].mxu0  ;;  %v728_v24 = vpop.f32.mrb[1].mxu1 }
 0x1e4   : > { %v713_v33 = vadd.f32 %v932_v6, %v712_v19  ;;  %v729_v3 = vadd.f32 %v932_v6, %v728_v24  ;;  %v958_v12 = vpop.f32.mrb[2].mxu0  ;;  %v962_v13 = vpop.f32.mrb[2].mxu1 }
 0x1e5   : > { %vm745_vm14 = vcmp.gt.f32.partialorder %v721_v9, 0.0  ;;  %v753_v14 = vmul.f32 0.2, %v721_v9  ;;  %vm749_vm15 = vcmp.gt.f32.partialorder %v737_v10, 0.0  ;;  %v757_v15 = vmul.f32 0.2, %v737_v10 }
 0x1e6   : > { %vm743_vm0 = vcmp.gt.f32.partialorder %v713_v33, 0.0  ;;  %v751_v16 = vmul.f32 0.2, %v713_v33  ;;  %vm747_vm1 = vcmp.gt.f32.partialorder %v729_v3, 0.0  ;;  %v755_v17 = vmul.f32 0.2, %v729_v3 }
 0x1e7   : > { %v761_v18 = vsel %vm745_vm14, %v721_v9, %v753_v14  ;;  %v765_v20 = vsel %vm749_vm15, %v737_v10, %v757_v15  ;;  %v724_v22 = vadd.f32 %v958_v12, %v932_v6  ;;  %v740_v23 = vadd.f32 %v962_v13, %v932_v6  ;;  %v715_v62 = vpop.f32.mrb[3].mxu0  ;;  %v731_v25 = vpop.f32.mrb[3].mxu1 }
 0x1e8   : > { %v769_v26 = vpack.c.bf16 %v761_v18, %v761_v18  ;;  %v773_v27 = vpack.c.bf16 %v765_v20, %v765_v20  ;;  %v759_v28 = vsel %vm743_vm0, %v713_v33, %v751_v16  ;;  %v763_v30 = vsel %vm747_vm1, %v729_v3, %v755_v17 }
 0x1e9   : > { %v767_v31 = vpack.c.bf16 %v759_v28, %v759_v28  ;;  %v771_v32 = vpack.c.bf16 %v763_v30, %v763_v30  ;;  %vm746_vm2 = vcmp.gt.f32.partialorder %v724_v22, 0.0  ;;  %v754_v34 = vmul.f32 0.2, %v724_v22 }
 0x1ea   : > { %778 = vst.msk [vmem:[%s215_s22 + $0x8] sm:$0xf] %vm775_vm13, %v769_v26  ;;  %782 = vst.msk [vmem:[%s215_s22 + $0x18] sm:$0xf] %vm775_vm13, %v773_v27  ;;  %vm750_vm3 = vcmp.gt.f32.partialorder %v740_v23, 0.0  ;;  %v716_v21 = vadd.f32 %v932_v6, %v715_v62  ;;  %v732_v36 = vadd.f32 %v932_v6, %v731_v25 }
 0x1eb   : > { %v758_v35 = vmul.f32 0.2, %v740_v23  ;;  %776 = vst.msk [vmem:[%s215_s22] sm:$0xf] %vm775_vm13, %v767_v31  ;;  %780 = vst.msk [vmem:[%s215_s22 + $0x10] sm:$0xf] %vm775_vm13, %v771_v32  ;;  %v762_v37 = vsel %vm746_vm2, %v724_v22, %v754_v34 }
 0x1ec   : > { %v770_v39 = vpack.c.bf16 %v762_v37, %v762_v37  ;;  %vm744_vm4 = vcmp.gt.f32.partialorder %v716_v21, 0.0  ;;  %v752_v43 = vmul.f32 0.2, %v716_v21  ;;  %vm748_vm5 = vcmp.gt.f32.partialorder %v732_v36, 0.0 }
 0x1ed   : > { %v766_v41 = vsel %vm750_vm3, %v740_v23, %v758_v35  ;;  %v756_v46 = vmul.f32 0.2, %v732_v36 }
 0x1ee   : > { %v774_v45 = vpack.c.bf16 %v766_v41, %v766_v41  ;;  %779 = vst.msk [vmem:[%s215_s22 + $0xc] sm:$0xf] %vm775_vm13, %v770_v39  ;;  %v760_v5 = vsel %vm744_vm4, %v716_v21, %v752_v43 }
 0x1ef   : > { %v768_v47 = vpack.c.bf16 %v760_v5, %v760_v5  ;;  %v764_v50 = vsel %vm748_vm5, %v732_v36, %v756_v46 }
 0x1f0   : > { %783 = vst.msk [vmem:[%s215_s22 + $0x1c] sm:$0xf] %vm775_vm13, %v774_v45  ;;  %v772_v52 = vpack.c.bf16 %v764_v50, %v764_v50 }
 0x1f1   : > { %777 = vst.msk [vmem:[%s215_s22 + $0x4] sm:$0xf] %vm775_vm13, %v768_v47 }
 0x1f2   : > { %781 = vst.msk [vmem:[%s215_s22 + $0x14] sm:$0xf] %vm775_vm13, %v772_v52 }
 0x1f3   : > { %1156 = shalt.err (!%p1153_p1)
}
 0x1f4   : > { %s1157_s6 = scalar_lea.hbm %s1628_s17, 512  ;;  %s1161_s7 = scalar_lea.hbm %s1679_s3, 1024 }
 0x1f5   : > { %p1158_p13 = scmp.ne.s32.totalorder %s1628_s17, %s1157_s6  ;;  %p1162_p4 = scmp.lt.u32.totalorder %s1628_s17, %s1679_s3 }
 0x1f6   : > { %p1163_p5 = scmp.lt.u32.totalorder %s1161_s7, %s1157_s6  ;;  %p1165_p11 = scmp.lt.u32.totalorder %s1157_s6, %s1628_s17 }
 0x1f7   : > { %p1159_p6 = pnand %p1158_p13, %p1695_p0 }
 0x1f8   : > { %p1164_p8 = por %p1163_p5, %p1162_p4 }
 0x1f9   : > { %p1160_p10 = pneg %p1159_p6 }
 0x1fa   : > { %p1166_p2 = por %p1165_p11, %p1164_p8 }
 0x1fc   : > { %p1167_p3 = pnand %p1166_p2, %p1160_p10 }
 0x1fe   : > { %1170 = shalt.err (!%p1167_p3)
}
 0x1ff   : > { %s1227_s27 = smov 64   ;;  %s1228_s22 = smov 4  }
 0x200   : > { %980 = dma.vmem_to_hbm [thread:$0]  (%p1695_p0), %s1630_s25, 512, %s1628_s17, %s785_s16, %s1227_s27, %s1227_s27, %s1228_s22  }
 0x201 PF: > { %s813_s29 = sand.u32 1, %s1201_s12   ;;  %p1696_p7 = scmp.ne.s32.totalorder %s1684_s19, 0 }
 0x202   : > { %p1697_p9 = scmp.ge.s32.totalorder %s1213_s15, 2  ;;  %s814_s24 = scalar_lea.sflag [#allocation4], %s813_s29 }
 0x204   : > { %p994_p12 = pnand %p1697_p9, %p1696_p7 }
 0x206   : > { %1196 = dma.done.wait (!%p994_p12), %s814_s24, 512  }
 0x207   : > { %1198 = vsyncadd (!%p994_p12), %s814_s24, 4294966784  ;;  %p17_p1 = scmp.ge.s32.totalorder %s1363_s5, 4   ;;  %s1698_s12 = smov %s1205_s13 }
 0x208   : > { %s1699_s13 = smov %s1209_s14  ;;  %s1700_s14 = smov %s1379_s10 }
 0x209   : > { %s1701_s15 = smov %s1363_s5  ;;  %19 = sbr.rel (!%p17_p1) target bundleno = 6 (0x6), region = 86 }
 0x210   :  { %819 = vsyncpa [#allocation3], 1 }
 0x211   :  { %821 = vsyncpa [#allocation3 + $0x1], 1 }
 0x212   :  { %822 = vsyncpa [#allocation6], 1 }
 0x213   :  { %823 = vsyncpa [#allocation4], 1 }
 0x214   :  { %825 = vsyncpa [#allocation4 + $0x1], 1 }

</bundles_post_ra>
